<compile_context>
chip_gen: v6e
topology: v6e:2x2x1
jax: 0.10.0
libtpu: 0.0.40
codegen_flags: <defaults>
</compile_context>

<pallas_src>
import jax
import jax.numpy as jnp
from jax.experimental import pallas as pl
from jax.experimental.pallas import tpu as pltpu


def _mixup_x_kernel(perm_ref, coeff_ref, x_ref, xp_ref, xo_ref):
    # perm_ref / coeff_ref are scalar-prefetch refs in SMEM; perm_ref also
    # feeds the index_maps that select the X[perm[i]] HBM block to DMA.
    i = pl.program_id(0)
    c = coeff_ref[i]                       # beta coefficient for sample i
    xo_ref[...] = c * x_ref[...] + (1.0 - c) * xp_ref[...]


def mixup_pallas(x, y, perm, coeffs, *, mixadd=False, z=None):
    """x: (B, ...) float32; y: (B, NC) float32; perm: (B,) int32; coeffs: (B,) float32."""
    B = x.shape[0]
    orig_x_shape = x.shape
    x_flat = x.reshape(B, -1)
    F = x_flat.shape[1]

    # --- feature tiling: (B, S, 128) with TS-row blocks ---------------------
    S_raw = pl.cdiv(F, 128)
    TS = min(2048, pl.cdiv(S_raw, 8) * 8)     # multiple of 8; f32 block <= 1 MiB
    S = pl.cdiv(S_raw, TS) * TS               # pad S so blocks divide evenly
    F_pad = S * 128
    if F_pad != F:
        # Pad to a lane/tile-friendly size instead of asserting; sliced back below.
        x_flat = jnp.pad(x_flat, ((0, 0), (0, F_pad - F)))
    x3 = x_flat.reshape(B, S, 128)
    num_ftiles = S // TS

    block_bytes = TS * 128 * x3.dtype.itemsize
    # 3 arrays x 2 pipeline buffers per step -> leave generous headroom, but
    # stay well under v7x's 64 MiB physical VMEM.
    vmem_limit = min(48 * 1024 * 1024, max(32 * 1024 * 1024, 8 * block_bytes))

    grid_spec = pltpu.PrefetchScalarGridSpec(
        num_scalar_prefetch=2,                 # perm, coeffs -> SMEM
        grid=(B, num_ftiles),
        in_specs=[
            # X block (i, f) for sample i
            pl.BlockSpec((1, TS, 128), lambda i, f, perm, coef: (i, f, 0)),
            # X block (perm[i], f)  -- the gather X[perm]
            pl.BlockSpec((1, TS, 128), lambda i, f, perm, coef: (perm[i], f, 0)),
        ],
        out_specs=pl.BlockSpec((1, TS, 128), lambda i, f, perm, coef: (i, f, 0)),
    )

    xo3 = pl.pallas_call(
        _mixup_x_kernel,
        out_shape=jax.ShapeDtypeStruct(x3.shape, x3.dtype),
        grid_spec=grid_spec,
        compiler_params=pltpu.CompilerParams(
            dimension_semantics=("parallel", "parallel"),
            vmem_limit_bytes=vmem_limit),
    )(perm.astype(jnp.int32), coeffs.astype(x3.dtype), x3, x3)

    x_out = xo3.reshape(B, F_pad)[:, :F].reshape(orig_x_shape)

    # --- Y blend: tiny (B, NC) tensor, done in plain JAX (perf review) ------
    if mixadd:
        y_out = jnp.clip(y + y[perm], 0.0, 1.0)
    else:
        yc = coeffs.reshape((-1,) + (1,) * (y.ndim - 1)).astype(y.dtype)
        y_out = yc * y + (1.0 - yc) * y[perm]

    if z is not None:
        return x_out, y_out, z
    return x_out, y_out


def mixup_reference(x, y, perm, coeffs, *, mixadd=False):
    xc = coeffs.reshape((-1,) + (1,) * (x.ndim - 1))
    x_out = xc * x + (1.0 - xc) * x[perm]
    if mixadd:
        y_out = jnp.clip(y + y[perm], 0.0, 1.0)
    else:
        yc = coeffs.reshape((-1,) + (1,) * (y.ndim - 1))
        y_out = yc * y + (1.0 - yc) * y[perm]
    return x_out, y_out


if __name__ == "__main__":
    mix_beta = 1.0

    key = jax.random.PRNGKey(0)
    kx, ky, kp, kc = jax.random.split(key, 4)

    B, C, H, W = 2, 4, 16, 16
    NC = 8
    x = jax.random.normal(kx, (B, C, H, W), dtype=jnp.float32)
    y = jax.random.uniform(ky, (B, NC), dtype=jnp.float32)

    # Randomness (perm + Beta(mix_beta, mix_beta) sample) is host-side glue,
    # matching torch.randperm / Beta.rsample in the original module.
    perm = jax.random.permutation(kp, B).astype(jnp.int32)
    coeffs = jax.random.beta(kc, mix_beta, mix_beta, (B,)).astype(jnp.float32)

    for mixadd in (False, True):
        x_out, y_out = mixup_pallas(x, y, perm, coeffs, mixadd=mixadd)
        jax.block_until_ready((x_out, y_out))
        x_ref, y_ref = mixup_reference(x, y, perm, coeffs, mixadd=mixadd)
        assert jnp.allclose(x_out, x_ref, atol=1e-5, rtol=1e-5)
        assert jnp.allclose(y_out, y_ref, atol=1e-5, rtol=1e-5)

    # Non-128-divisible feature size exercises the wrapper-side pad/slice path.
    x2 = jax.random.normal(kx, (B, 3, 15, 15), dtype=jnp.float32)
    x2_out, y2_out = mixup_pallas(x2, y, perm, coeffs, mixadd=False)
    jax.block_until_ready((x2_out, y2_out))
    x2_ref, y2_ref = mixup_reference(x2, y, perm, coeffs, mixadd=False)
    assert jnp.allclose(x2_out, x2_ref, atol=1e-5, rtol=1e-5)
    assert jnp.allclose(y2_out, y2_ref, atol=1e-5, rtol=1e-5)

    print("KERNEL_OK")
</pallas_src>

<mosaic_0001>
module attributes {stable_mosaic.version = 11 : i64} {
  func.func @_mixup_x_kernel(%arg0: i32, %arg1: i32, %arg2: memref<2xi32, #tpu.memory_space<smem>>, %arg3: memref<2xf32, #tpu.memory_space<smem>>, %arg4: memref<1x8x128xf32, #tpu.memory_space<vmem>>, %arg5: memref<1x8x128xf32, #tpu.memory_space<vmem>>, %arg6: memref<1x8x128xf32, #tpu.memory_space<vmem>>) attributes {dimension_semantics = [#tpu.dimension_semantics<parallel>, #tpu.dimension_semantics<parallel>], iteration_bounds = array<i64: 2, 1>, scalar_prefetch = 2 : i64, scratch_operands = 0 : i64, tpu.core_type = #tpu.core_type<tc>, window_params = [{transform_indices = @transform_0, window_bounds = array<i64: 1, 8, 128>}, {transform_indices = @transform_1, window_bounds = array<i64: 1, 8, 128>}, {transform_indices = @transform_2, window_bounds = array<i64: 1, 8, 128>}]} {
    %0 = arith.index_cast %arg0 : i32 to index
    %1 = memref.load %arg3[%0] : memref<2xf32, #tpu.memory_space<smem>>
    %c0 = arith.constant 0 : index
    %c0_0 = arith.constant 0 : index
    %c0_1 = arith.constant 0 : index
    %2 = vector.load %arg4[%c0, %c0_0, %c0_1] : memref<1x8x128xf32, #tpu.memory_space<vmem>>, vector<1x8x128xf32>
    %3 = vector.broadcast %1 : f32 to vector<1x8x128xf32>
    %4 = arith.mulf %3, %2 : vector<1x8x128xf32>
    %cst = arith.constant 1.000000e+00 : f32
    %5 = arith.subf %cst, %1 : f32
    %c0_2 = arith.constant 0 : index
    %c0_3 = arith.constant 0 : index
    %c0_4 = arith.constant 0 : index
    %6 = vector.load %arg5[%c0_2, %c0_3, %c0_4] : memref<1x8x128xf32, #tpu.memory_space<vmem>>, vector<1x8x128xf32>
    %7 = vector.broadcast %5 : f32 to vector<1x8x128xf32>
    %8 = arith.mulf %7, %6 : vector<1x8x128xf32>
    %9 = arith.addf %4, %8 : vector<1x8x128xf32>
    %c0_5 = arith.constant 0 : index
    %c0_6 = arith.constant 0 : index
    %c0_7 = arith.constant 0 : index
    %10 = vector.load %arg6[%c0_5, %c0_6, %c0_7] : memref<1x8x128xf32, #tpu.memory_space<vmem>>, vector<1x8x128xf32>
    tpu.vector_store %arg6[%c0_5, %c0_6, %c0_7], %9 {strides = array<i32>} : memref<1x8x128xf32, #tpu.memory_space<vmem>>, vector<1x8x128xf32>,
    return
  }
  func.func @transform_0(%arg0: i32, %arg1: i32, %arg2: memref<2xi32, #tpu.memory_space<smem>>, %arg3: memref<2xf32, #tpu.memory_space<smem>>) -> (i32, i32, i32) {
    %c0_i32 = arith.constant 0 : i32
    %c0_i32_0 = arith.constant 0 : i32
    return %arg0, %arg1, %c0_i32 : i32, i32, i32
  }
  func.func @transform_1(%arg0: i32, %arg1: i32, %arg2: memref<2xi32, #tpu.memory_space<smem>>, %arg3: memref<2xf32, #tpu.memory_space<smem>>) -> (i32, i32, i32) {
    %0 = arith.index_cast %arg0 : i32 to index
    %1 = memref.load %arg2[%0] : memref<2xi32, #tpu.memory_space<smem>>
    %c0_i32 = arith.constant 0 : i32
    %c0_i32_0 = arith.constant 0 : i32
    return %1, %arg1, %c0_i32 : i32, i32, i32
  }
  func.func @transform_2(%arg0: i32, %arg1: i32, %arg2: memref<2xi32, #tpu.memory_space<smem>>, %arg3: memref<2xf32, #tpu.memory_space<smem>>) -> (i32, i32, i32) {
    %c0_i32 = arith.constant 0 : i32
    %c0_i32_0 = arith.constant 0 : i32
    return %arg0, %arg1, %c0_i32 : i32, i32, i32
  }
}

</mosaic_0001>

<bundles_post_ra>
// kernel: tpu_custom_call.1
= control target key start
LH: loop header
LB: loop body
LE: loop exit
PB: predicated region body
PF: predicated region fallthrough
CT: control target
= control target key end

     0   :  { %s660_s15 = smov [#allocation3]   ;;  %s943_s0 = inlined_call_operand.hbm [shape: s32[2], index: 0, kind: input, shape index: {}]   ;;  %s944_s2 = inlined_call_operand.hbm [shape: f32[2,8,128], index: 2, kind: input, shape index: {}]   ;;  %s945_s3 = inlined_call_operand.hbm [shape: f32[2,8,128], index: 3, kind: input, shape index: {}]   ;;  %s946_s4 = inlined_call_operand.hbm [shape: f32[2,8,128], index: 4, kind: output, shape index: {}]   ;;  %s947_s1 = inlined_call_operand.vmem [shape: f32[2], index: 1, kind: input, shape index: {}]  }
   0x1   :  { %955 = sst [smem:[#allocation20_spill]] %s944_s2  ;;  %s11_s20 = sshll.u32 %s947_s1, 4  ;;  %s12_s20 = int_to_ptr.vmem [resolvable:$true] %s11_s20 }
   0x2   :  { %10 = dma.hbm_to_smem %s943_s0, 16, %s660_s15, [#allocation2] }
   0x3   :  { %s480_s21 = scalar_lea.vmem %s12_s20, 16  ;;  %p485_p1 = scmp.lt.s32.totalorder %s12_s20, %s12_s20 }
   0x4   :  { %p481_p0 = scmp.ne.s32.totalorder %s12_s20, %s480_s21  ;;  %p486_p2 = scmp.lt.s32.totalorder %s480_s21, %s480_s21 }
   0x6   :  { %p487_p3 = por %p486_p2, %p485_p1 }
   0x8   :  { %p488_p4 = pnand %p487_p3, %p481_p0 }
   0xa   :  { %491 = shalt.err (!%p488_p4)  }
   0xb   :  { %s661_s22 = smov [#allocation4]  }
   0xc   :  { %14 = dma.vmem_to_smem %s12_s20, 16, %s661_s22, [#allocation2] }
   0xd   :  { %610 = dma.done.wait [#allocation2], 32 }
   0xe   :  { %611 = vsyncadd [#allocation2], 4294967264 }
   0xf   :  { %16 = sfence }
  0x10   :  { %17 = vsyncpa [#allocation6], 0 }
  0x11   :  { %19 = vsyncpa [#allocation6 + $0x1], 0 }
  0x12   :  { %20 = vsyncpa [#allocation9], 0 }
  0x13   :  { %22 = vsyncpa [#allocation9 + $0x1], 0 }
  0x14   :  { %23 = vsyncpa [#allocation7], 0 }
  0x15   :  { %25 = vsyncpa [#allocation7 + $0x1], 0  ;;  %s696_s0 = smov 0   ;;  %s698_s1 = smov 0  }
  0x16   :  { %s700_s23 = smov 0   ;;  %s702_s24 = smov 0  }
  0x17   :  { %s704_s25 = smov 0   ;;  %s706_s26 = smov 0  }
  0x18   :  { %s708_s27 = smov 0   ;;  %s710_s28 = smov 0  }
  0x19   :  { %s712_s29 = smov 0  }
  0x1a LB: > { %956 = sst [smem:[#allocation17_spill]] %s654_s28  ;;  %s359_s30 = sadd.s32 4294967295, %s658_s29   ;;  %s658_s29 = sphi %s712_s29, %s31_s29   ;;  %s654_s28 = sphi %s710_s28, %s981_s28   ;;  %s650_s27 = sphi %s708_s27, %s980_s27   ;;  %s646_s26 = sphi %s706_s26, %s987_s26   ;;  %s642_s25 = sphi %s704_s25, %s986_s25   ;;  %s638_s24 = sphi %s702_s24, %s985_s24   ;;  %s634_s23 = sphi %s700_s23, %s984_s23   ;;  %s630_s1 = sphi %s698_s1, %s983_s1   ;;  %s626_s0 = sphi %s696_s0, %s982_s0  }
  0x1b   : > { %s360_s5 = sadd.s32 4294967294, %s658_s29   ;;  %s43_s6 = sadd.s32 1, %s654_s28 }
  0x1c   : > { %s52_s7 = sadd.s32 1, %s646_s26  ;;  %p45_p5 = scmp.ge.s32.totalorder %s43_s6, 2 }
  0x1d   : > { %p59_p6 = scmp.ne.s32.totalorder %s646_s26, %s642_s25  ;;  %p949_p7 = scmp.eq.s32.totalorder %s658_s29, 0 }
  0x1e   : > { %p65_p8 = scmp.ne.s32.totalorder %s642_s25, %s638_s24  ;;  %s989_s6 = smov (%p45_p5, %s43_s6), 0 }
  0x1f   : > { %957 = sst [smem:[#allocation18_spill]] %s989_s6  ;;  %p757_p9 = por %p949_p7, %p59_p6 }
  0x20   : > { %p761_p10 = scmp.eq.s32.totalorder %s359_s30, 0  ;;  %s47_s10 = ssub.s32 %s654_s28, %s989_s6 }
  0x21   : > { %s768_s11 = sld [smem:[#allocation3 + %s654_s28]]  ;;  %p50_p11 = scmp.eq.s32.totalorder %s47_s10, 0 }
  0x22   : > { %p775_p12 = por %p761_p10, %p65_p8  ;;  %s780_s13 = sld [smem:[#allocation3 + %s989_s6]] }
  0x23   : > { %p121_p13 = scmp.eq.s32.totalorder %s359_s30, 1  ;;  %p127_p1 = scmp.eq.s32.totalorder %s360_s5, 1 }
  0x24   : > { %s960_s12 = scalar_select %p775_p12, 1, 0 }
  0x25   : > { %s783_s14 = scalar_select %p50_p11, %s646_s26, %s52_s7  }
  0x26   : > { %p788_p0 = por %p121_p13, %p59_p6  ;;  %p950_p3 = scmp.lt.s32.totalorder %s658_s29, 2 }
  0x27   : > { %961 = sst [smem:[#allocation19_spill]] %s783_s14  ;;  %p797_p4 = por %p127_p1, %p65_p8 }
  0x28   : > { %s962_s15 = scalar_select %p788_p0, 1, 0 }
  0x29   : > { %s963_s16 = scalar_select %p797_p4, 1, 0 }
  0x2a   : > { %s147_s17 = sand.u32 1, %s646_s26   ;;  %s364_s19 = sshll.u32 %s654_s28, 7 }
  0x2b   : > { %s363_s18 = sshll.u32 %s147_s17, 3  ;;  %s964_s2 = sld [smem:[#allocation20_spill]] }
  0x2c   : > { %s151_s30 = scalar_lea.vmem [#allocation5], %s363_s18  ;;  %p810_p5 = pnand %p950_p3, %p757_p9 }
  0x2d   : > { %s159_s7 = sshll.u32 %s151_s30, 4  ;;  %p367_p6 = scmp.ge.s32.totalorder %s658_s29, 1  ;;  %s160_s7 = int_to_ptr.vmem [resolvable:$true] %s159_s7 }
  0x2e   : > { %p184_p8 = scmp.lt.s32.totalorder %s658_s29, 3  ;;  %s148_s10 = scalar_lea.sflag [#allocation6], %s147_s17 }
  0x2f   : > { %p494_p11 = pneg %p810_p5  ;;  %s505_s6 = scalar_lea.vmem %s160_s7, 128 }
  0x30   : > { %p506_p13 = scmp.ne.s32.totalorder %s160_s7, %s505_s6 }
  0x31   : > { %s157_s22 = scalar_lea.hbm %s964_s2, %s364_s19  ;;  %s662_s19 = smov [#allocation5]  }
  0x32   : > { %p508_p1 = pnand %p506_p13, %p494_p11  ;;  %s510_s18 = sshll.u32 %s662_s19, 4  ;;  %s511_s18 = int_to_ptr.vmem [resolvable:$false] %s510_s18 }
  0x33   : > { %s512_s20 = scalar_lea.vmem %s511_s18, 256  ;;  %p513_p7 = scmp.lt.s32.totalorder %s160_s7, %s511_s18 }
  0x34   : > { %p509_p2 = pneg %p508_p1  ;;  %p514_p4 = scmp.lt.s32.totalorder %s512_s20, %s505_s6 }
  0x36   : > { %p515_p9 = por %p514_p4, %p513_p7 }
  0x38   : > { %p516_p3 = pnand %p515_p9, %p509_p2 }
  0x3a   : > { %519 = shalt.err (!%p516_p3)
}
  0x3b   : > { %386 = dma.hbm_to_vmem [thread:$0]  (!%p810_p5), %s157_s22, 128, %s160_s7, %s148_s10  }
  0x3c   : > { %p824_p7 = pnand %p367_p6, %p184_p8  ;;  %s77_s8 = ssub.s32 %s768_s11, %s780_s13 }
  0x3d   : > { %s82_s17 = sadd.s32 1, %s634_s23  ;;  %p80_p2 = scmp.eq.s32.totalorder %s77_s8, 0 }
  0x3e   : > { %s966_s6 = scalar_select %p824_p7, 1, 0 }
  0x3f   : > { %p89_p3 = scmp.ne.s32.totalorder %s634_s23, %s630_s1  ;;  %p95_p4 = scmp.ne.s32.totalorder %s630_s1, %s626_s0 }
  0x40   : > { %s166_s21 = sand.u32 1, %s634_s23   ;;  %p967_p11 = scmp.eq.s32.totalorder %s658_s29, 0 }
  0x41   : > { %s837_s30 = scalar_select %p80_p2, %s634_s23, %s82_s17  }
  0x42   : > { %p91_p13 = por %p89_p3, %p967_p11  ;;  %p843_p1 = por %p95_p4, %p761_p10 }
  0x43   : > { %s365_s7 = sshll.u32 %s166_s21, 3  ;;  %p969_p5 = scmp.lt.s32.totalorder %s658_s29, 2 }
  0x44   : > { %s968_s22 = scalar_select %p843_p1, 1, 0 }
  0x45   : > { %p849_p6 = pnand %p969_p5, %p91_p13  ;;  %p971_p8 = pmov %p969_p5 }
  0x46   : > { %s376_s11 = scalar_select %p91_p13, [#allocation3], [#allocation11] }
  0x47   : > { %s377_s13 = scalar_select %p91_p13, %s654_s28, 0 }
  0x48   : > { %s991_s11 = smov (!%p971_p8, %s376_s11), [#allocation12]  ;;  %p972_p9 = pmov %p969_p5 }
  0x49   : > { %s170_s10 = scalar_lea.vmem [#allocation8], %s365_s7  ;;  %s167_s17 = scalar_lea.sflag [#allocation9], %s166_s21 }
  0x4a   : > { %s993_s13 = smov (!%p972_p9, %s377_s13), 0  ;;  %s179_s9 = sshll.u32 %s170_s10, 4  ;;  %s858_s9 = int_to_ptr.vmem [resolvable:$true] %s179_s9 }
  0x4b   : > { %s171_s0 = sld [smem:[%s991_s11 + %s993_s13]]  ;;  %p522_p2 = pneg %p849_p6 }
  0x4c   : > { %s525_s11 = scalar_lea.hbm %s945_s3, 256 }
  0x51   : > { %s366_s19 = sshll.u32 %s171_s0, 7 }
  0x52   : > { %s177_s8 = scalar_lea.hbm %s945_s3, %s366_s19 }
  0x53   : > { %s520_s2 = scalar_lea.hbm %s177_s8, 128  ;;  %p526_p11 = scmp.lt.s32.totalorder %s177_s8, %s945_s3 }
  0x54   : > { %p521_p10 = scmp.ne.s32.totalorder %s177_s8, %s520_s2  ;;  %p527_p13 = scmp.lt.s32.totalorder %s525_s11, %s520_s2 }
  0x56   : > { %p523_p3 = pnand %p522_p2, %p521_p10  ;;  %p528_p5 = por %p527_p13, %p526_p11 }
  0x58   : > { %p524_p4 = pneg %p523_p3 }
  0x5a   : > { %p529_p8 = pnand %p528_p5, %p524_p4 }
  0x5c   : > { %532 = shalt.err (!%p529_p8)
}
  0x5d   : > { %s533_s21 = scalar_lea.vmem %s858_s9, 128  ;;  %s663_s0 = smov [#allocation8]  }
  0x5e   : > { %p534_p9 = scmp.ne.s32.totalorder %s858_s9, %s533_s21  ;;  %s538_s10 = sshll.u32 %s663_s0, 4  ;;  %s539_s10 = int_to_ptr.vmem [resolvable:$false] %s538_s10 }
  0x5f   : > { %s540_s28 = scalar_lea.vmem %s539_s10, 256  ;;  %p541_p3 = scmp.lt.s32.totalorder %s858_s9, %s539_s10 }
  0x60   : > { %p536_p0 = pnand %p534_p9, %p522_p2  ;;  %p542_p1 = scmp.lt.s32.totalorder %s540_s28, %s533_s21 }
  0x62   : > { %p537_p10 = pneg %p536_p0  ;;  %p543_p12 = por %p542_p1, %p541_p3 }
  0x64   : > { %p544_p7 = pnand %p543_p12, %p537_p10 }
  0x66   : > { %547 = shalt.err (!%p544_p7)
}
  0x67   : > { %391 = dma.hbm_to_vmem [thread:$0]  (!%p849_p6), %s177_s8, 128, %s858_s9, %s167_s17  }
  0x68   : > { %p973_p4 = scmp.ne.s32.totalorder %s966_s6, 0 }
  0x69   : > { %s880_s2 = sand.u32 (!%p973_p4), 1, %s642_s25   ;;  %p974_p0 = scmp.ne.s32.totalorder (!%p973_p4), %s960_s12, 0 }
  0x6a   : > { %188 = sbr.rel (%p973_p4) target bundleno = 142 (0x8e), region = 28  ;;  %s368_s14 = sshll.u32 (!%p973_p4), %s880_s2, 3 }
  0x6b   : > { %s191_s19 = scalar_lea.sflag (!%p973_p4), [#allocation6], %s880_s2  ;;  %s194_s18 = scalar_lea.vmem (!%p973_p4), [#allocation5], %s368_s14 }
  0x6f   : > { %613 = dma.done.wait (%p974_p0), %s191_s19, 128  }
  0x70   : > { %615 = vsyncadd (%p974_p0), %s191_s19, 4294967168  ;;  %s199_s5 = sand.u32 1, %s630_s1   ;;  %p975_p12 = scmp.ne.s32.totalorder %s968_s22, 0 }
  0x71   : > { %s369_s9 = sshll.u32 %s199_s5, 3  ;;  %s200_s6 = scalar_lea.sflag [#allocation9], %s199_s5 }
  0x72   : > { %s203_s20 = scalar_lea.vmem [#allocation8], %s369_s9 }
  0x73   : > { %617 = dma.done.wait (%p975_p12), %s200_s6, 128  }
  0x74   : > { %619 = vsyncadd (%p975_p12), %s200_s6, 4294967168  ;;  %s230_s8 = sld [smem:[#allocation4 + %s650_s27]]  ;;  %v231_v0 = vld [vmem:[%s194_s18] sm:$0xff]  ;;  %v235_v2 = vld [vmem:[%s203_s20] sm:$0xff]  ;;  %s228_s17 = scalar_lea.vmem [#allocation10], %s368_s14 }
  0x75   : > { %s255_s11 = sshll.u32 %s228_s17, 4  ;;  %s372_s7 = sshll.u32 %s650_s27, 7  ;;  %s256_s11 = int_to_ptr.vmem [resolvable:$true] %s255_s11 }
  0x76   : > { %s253_s21 = scalar_lea.hbm %s946_s4, %s372_s7  ;;  %s241_s0 = scalar_lea.sflag [#allocation7], %s880_s2 }
  0x77   : > { %s548_s10 = scalar_lea.vmem %s256_s11, 128  ;;  %p976_p1 = scmp.ne.s32.totalorder %s962_s15, 0 }
  0x78   : > { %p549_p7 = scmp.ne.s32.totalorder %s256_s11, %s548_s10  ;;  %s664_s28 = smov [#allocation10]  }
  0x79   : > { %s552_s19 = sshll.u32 %s664_s28, 4  ;;  %s553_s19 = int_to_ptr.vmem [resolvable:$false] %s552_s19 }
  0x7a   : > { %v232_v1 = vstv %s230_s8  ;;  %s234_s12 = ssub.f32 1.0, %s230_s8  ;;  %p550_p6 = pnand %p549_p7, %p976_p1 }
  0x7b   : > { %v233_v3 = vmul.f32 %v232_v1, %v231_v0  ;;  %s554_s14 = scalar_lea.vmem %s553_s19, 256  ;;  %p555_p11 = scmp.lt.s32.totalorder %s256_s11, %s553_s19 }
  0x7c   : > { %v236_v4 = vstv %s234_s12  ;;  %p551_p2 = pneg %p550_p6  ;;  %p556_p13 = scmp.lt.s32.totalorder %s554_s14, %s548_s10 }
  0x7d   : > { %v237_v5 = vmul.f32 %v236_v4, %v235_v2 }
  0x7e   : > { %p557_p5 = por %p556_p13, %p555_p11 }
  0x7f   : > { %v238_v6 = vadd.f32 %v237_v5, %v233_v3 }
  0x80   : > { %p558_p8 = pnand %p557_p5, %p551_p2 }
  0x81   : > { %239 = vst [vmem:[%s228_s17] sm:$0xff] %v238_v6 }
  0x82   : > { %561 = shalt.err (!%p558_p8)
}
  0x83   : > { %s562_s27 = scalar_lea.hbm %s253_s21, 128  ;;  %s566_s5 = scalar_lea.hbm %s946_s4, 256 }
  0x84   : > { %p563_p9 = scmp.ne.s32.totalorder %s253_s21, %s562_s27  ;;  %p567_p4 = scmp.lt.s32.totalorder %s253_s21, %s946_s4 }
  0x85   : > { %p568_p0 = scmp.lt.s32.totalorder %s566_s5, %s562_s27 }
  0x86   : > { %p564_p10 = pnand %p563_p9, %p976_p1 }
  0x87   : > { %p569_p12 = por %p568_p0, %p567_p4 }
  0x88   : > { %p565_p3 = pneg %p564_p10 }
  0x8a   : > { %p570_p7 = pnand %p569_p12, %p565_p3 }
  0x8c   : > { %573 = shalt.err (!%p570_p7)
}
  0x8d   : > { %381 = dma.vmem_to_hbm [thread:$0]  (%p976_p1), %s256_s11, 128, %s253_s21, %s241_s0  }
  0x8e PF: > { %s267_s20 = sand.u32 1, %s638_s24   ;;  %p977_p6 = scmp.ne.s32.totalorder %s963_s16, 0 }
  0x8f   : > { %p978_p2 = scmp.ge.s32.totalorder %s658_s29, 2  ;;  %s268_s8 = scalar_lea.sflag [#allocation7], %s267_s20 }
  0x91   : > { %p393_p11 = pnand %p978_p2, %p977_p6 }
  0x93   : > { %p394_p13 = pneg %p393_p11 }
  0x95   : > { %621 = dma.done.wait (%p394_p13), %s268_s8, 128  }
  0x96   : > { %623 = vsyncadd (%p394_p13), %s268_s8, 4294967168  ;;  %s31_s29 = sadd.s32 1, %s658_s29   ;;  %s979_s15 = sld [smem:[#allocation19_spill]] }
  0x97   : > { %p28_p5 = scmp.ge.s32.totalorder %s31_s29, 4   ;;  %s980_s27 = sld [smem:[#allocation17_spill]] }
  0x98   : > { %s981_s28 = sld [smem:[#allocation18_spill]]  ;;  %s982_s0 = smov %s630_s1 }
  0x99   : > { %s983_s1 = smov %s634_s23  ;;  %s984_s23 = smov %s837_s30 }
  0x9a   : > { %s985_s24 = smov %s642_s25  ;;  %s986_s25 = smov %s646_s26 }
  0x9b   :  { %30 = sbr.rel (!%p28_p5) target bundleno = 26 (0x1a), region = 86 }
  0x9c   : > { %s987_s26 = smov %s979_s15 }
  0xa0   :  { %273 = vsyncpa [#allocation6], 1 }
  0xa1   :  { %275 = vsyncpa [#allocation6 + $0x1], 1 }
  0xa2   :  { %276 = vsyncpa [#allocation9], 1 }
  0xa3   :  { %278 = vsyncpa [#allocation9 + $0x1], 1 }
  0xa4   :  { %279 = vsyncpa [#allocation7], 1 }
  0xa5   :  { %281 = vsyncpa [#allocation7 + $0x1], 1 }

</bundles_post_ra>
